<compile_context>
chip_gen: v6e
topology: v6e:2x2x1
jax: 0.10.0
libtpu: 0.0.40
codegen_flags: <defaults>
</compile_context>

<pallas_src>
import functools
import math

import jax
import jax.numpy as jnp
from jax import lax
from jax.experimental import pallas as pl
from jax.experimental.pallas import tpu as pltpu


def attention_head_kernel(x_ref, wqkv_ref, bqkv_ref, wfc_ref, bfc_ref, o_ref,
                          *, batch, seq, num_heads, head_dim):
    B, S, H, Dh = batch, seq, num_heads, head_dim
    HDh = H * Dh

    x = x_ref[...]                                                 # (B*S, D_in)

    # Fused Q/K/V projection for all batches & heads: one lane-dense MXU
    # matmul. The 1/sqrt(Dh) scale is pre-folded into the Q columns.
    qkv = (jnp.dot(x, wqkv_ref[...], preferred_element_type=jnp.float32)
           + bqkv_ref[...])                                        # (B*S, 3*H*Dh)

    rows = []
    for b in range(B):                                             # static unroll
        r0 = b * S                                                 # sublane-aligned (S=8)
        ctxs = []
        for h in range(H):                                         # static unroll
            q = qkv[r0:r0 + S, h * Dh:(h + 1) * Dh]                # (S, Dh), pre-scaled
            k = qkv[r0:r0 + S, HDh + h * Dh:HDh + (h + 1) * Dh]    # (S, Dh)
            v = qkv[r0:r0 + S, 2 * HDh + h * Dh:2 * HDh + (h + 1) * Dh]

            # q @ k^T without materializing a transpose of k.
            s = lax.dot_general(q, k, (((1,), (1,)), ((), ())),
                                preferred_element_type=jnp.float32)  # (S, S)
            m = s.max(axis=-1, keepdims=True)
            p = jnp.exp(s - m)
            # Exact reciprocal keeps the 1e-4 agreement with the reference.
            attn = p * pl.reciprocal(p.sum(axis=-1, keepdims=True), approx=False)
            ctxs.append(jnp.dot(attn, v, preferred_element_type=jnp.float32))
        rows.append(jnp.concatenate(ctxs, axis=-1))                # (S, H*Dh) lane-dense

    ctx_cat = jnp.concatenate(rows, axis=0)                        # (B*S, H*Dh)

    out = (jnp.dot(ctx_cat, wfc_ref[...], preferred_element_type=jnp.float32)
           + bfc_ref[...])                                         # (B*S, Dout)
    o_ref[...] = out.astype(o_ref.dtype)


def prepare_params(params):
    """One-time packing of per-head weights into fused lane-dense operands."""
    wq, bq, wk, bk, wv, bv, wfc, bfc = params
    H, D_in, Dh = wq.shape
    HDh = H * Dh
    Dout = wfc.shape[-1]
    scale = 1.0 / math.sqrt(Dh)

    def pack_heads(w):                    # (H, D_in, Dh) -> (D_in, H*Dh), head-major
        return jnp.transpose(w, (1, 0, 2)).reshape(D_in, HDh)

    # Fold the softmax 1/sqrt(Dh) into the Q slab (weights AND bias).
    w_qkv = jnp.concatenate(
        [pack_heads(wq) * scale, pack_heads(wk), pack_heads(wv)],
        axis=-1)                                                     # (D_in, 3*H*Dh)
    b_qkv = jnp.concatenate(
        [bq.reshape(1, HDh) * scale, bk.reshape(1, HDh), bv.reshape(1, HDh)],
        axis=-1)                                                     # (1, 3*H*Dh)
    w_fc = wfc.reshape(HDh, Dout)                                    # (H*Dh, Dout)
    b_fc = bfc.reshape(1, Dout)                                      # (1, Dout)
    packed = (jnp.asarray(w_qkv), jnp.asarray(b_qkv),
              jnp.asarray(w_fc), jnp.asarray(b_fc))
    return packed, (H, Dh)


@functools.partial(jax.jit, static_argnames=("num_heads", "head_dim"))
def attention_head_forward(x, packed, *, num_heads, head_dim):
    w_qkv, b_qkv, w_fc, b_fc = packed
    B, S, D_in = x.shape
    H, Dh = num_heads, head_dim
    HDh = H * Dh
    Dout = w_fc.shape[-1]

    # Free contiguous reshape: one (B*S, D_in) slab -> one grid step, one
    # projection matmul and one fc matmul over all rows.
    x2d = x.reshape(B * S, D_in)

    flops = (2 * (B * S) * D_in * (3 * HDh)          # fused qkv projection
             + B * H * (2 * S * S * Dh               # q @ k^T
                        + 2 * S * S * Dh)            # attn @ v
             + 2 * (B * S) * HDh * Dout)             # fc
    transcendentals = B * H * S * S                  # exp
    bytes_accessed = (x2d.size + w_qkv.size + b_qkv.size + w_fc.size
                      + b_fc.size + B * S * Dout) * 4
    cost = pl.CostEstimate(flops=flops, transcendentals=transcendentals,
                           bytes_accessed=bytes_accessed)

    kernel = functools.partial(attention_head_kernel, batch=B, seq=S,
                               num_heads=H, head_dim=Dh)

    out2d = pl.pallas_call(
        kernel,
        out_shape=jax.ShapeDtypeStruct((B * S, Dout), x.dtype),
        grid_spec=pltpu.PrefetchScalarGridSpec(
            num_scalar_prefetch=0,
            grid=(1,),                                            # single step
            in_specs=[
                pl.BlockSpec((B * S, D_in), lambda i: (0, 0)),    # x slab
                pl.BlockSpec((D_in, 3 * HDh), lambda i: (0, 0)),  # W_qkv (fused)
                pl.BlockSpec((1, 3 * HDh), lambda i: (0, 0)),     # b_qkv (fused)
                pl.BlockSpec((HDh, Dout), lambda i: (0, 0)),      # W_fc
                pl.BlockSpec((1, Dout), lambda i: (0, 0)),        # b_fc
            ],
            out_specs=pl.BlockSpec((B * S, Dout), lambda i: (0, 0)),
        ),
        compiler_params=pltpu.CompilerParams(
            dimension_semantics=("arbitrary",)),
        cost_estimate=cost,
    )(x2d, w_qkv, b_qkv, w_fc, b_fc)

    return out2d.reshape(B, S, Dout)


def reference(x, params):
    """Pure-JAX reference of the same forward pass."""
    wq, bq, wk, bk, wv, bv, wfc, bfc = params
    H, _, Dh = wq.shape
    ctxs = []
    for h in range(H):
        q = x @ wq[h] + bq[h, 0]
        k = x @ wk[h] + bk[h, 0]
        v = x @ wv[h] + bv[h, 0]
        s = (q @ jnp.swapaxes(k, -1, -2)) / math.sqrt(Dh)
        attn = jax.nn.softmax(s, axis=-1)
        ctxs.append(attn @ v)
    cat = jnp.concatenate(ctxs, axis=-1)                 # (B, S, H*Dh)
    w_flat = wfc.reshape(H * Dh, wfc.shape[-1])          # (H*Dh, Dout)
    return cat @ w_flat + bfc[0, 0]


def init_params(key, input_dim, hidden_dim, num_heads):
    """Deterministic PyTorch-Linear-style init: U(-1/sqrt(fan_in), 1/sqrt(fan_in))."""
    ks = jax.random.split(key, 8)

    def u(k, shape, fan_in):
        bound = 1.0 / math.sqrt(fan_in)
        return jax.random.uniform(k, shape, jnp.float32, -bound, bound)

    H, Din, Dh = num_heads, input_dim, hidden_dim
    wq = u(ks[0], (H, Din, Dh), Din)
    bq = u(ks[1], (H, 1, Dh), Din)
    wk = u(ks[2], (H, Din, Dh), Din)
    bk = u(ks[3], (H, 1, Dh), Din)
    wv = u(ks[4], (H, Din, Dh), Din)
    bv = u(ks[5], (H, 1, Dh), Din)
    wfc = u(ks[6], (H, Dh, Dh), H * Dh)    # fc: Linear(H*Dh -> Dh), per-head slices
    bfc = u(ks[7], (1, 1, Dh), H * Dh)
    return (wq, bq, wk, bk, wv, bv, wfc, bfc)


if __name__ == "__main__":
    B, S, input_dim, hidden_dim, num_heads = 2, 8, 16, 32, 4

    key = jax.random.PRNGKey(0)
    kx, kp = jax.random.split(key)
    x = jax.random.normal(kx, (B, S, input_dim), jnp.float32)
    params = init_params(kp, input_dim, hidden_dim, num_heads)

    # One-time weight packing (hoisted out of the forward path).
    packed, (H, Dh) = prepare_params(params)
    packed = jax.block_until_ready(packed)

    out = attention_head_forward(x, packed, num_heads=H, head_dim=Dh)
    out = jax.block_until_ready(out)

    ref = reference(x, params)
    assert out.shape == (B, S, hidden_dim)
    assert jnp.allclose(out, ref, atol=1e-4, rtol=1e-4), (
        f"max abs err {jnp.max(jnp.abs(out - ref))}")

    print("KERNEL_OK")
</pallas_src>

<mosaic_0001>
module attributes {stable_mosaic.version = 11 : i64} {
  func.func @attention_head_kernel(%arg0: i32, %arg1: memref<16x16xf32, #tpu.memory_space<vmem>>, %arg2: memref<16x384xf32, #tpu.memory_space<vmem>>, %arg3: memref<1x384xf32, #tpu.memory_space<vmem>>, %arg4: memref<128x32xf32, #tpu.memory_space<vmem>>, %arg5: memref<1x32xf32, #tpu.memory_space<vmem>>, %arg6: memref<16x32xf32, #tpu.memory_space<vmem>>) attributes {dimension_semantics = [#tpu.dimension_semantics<arbitrary>], iteration_bounds = array<i64: 1>, scalar_prefetch = 0 : i64, scratch_operands = 0 : i64, tpu.core_type = #tpu.core_type<tc>, window_params = [{pipeline_mode = #tpu.pipeline_mode<synchronous>, transform_indices = @transform_0, window_bounds = array<i64: 16, 16>}, {pipeline_mode = #tpu.pipeline_mode<synchronous>, transform_indices = @transform_1, window_bounds = array<i64: 16, 384>}, {pipeline_mode = #tpu.pipeline_mode<synchronous>, transform_indices = @transform_2, window_bounds = array<i64: 1, 384>}, {pipeline_mode = #tpu.pipeline_mode<synchronous>, transform_indices = @transform_3, window_bounds = array<i64: 128, 32>}, {pipeline_mode = #tpu.pipeline_mode<synchronous>, transform_indices = @transform_4, window_bounds = array<i64: 1, 32>}, {pipeline_mode = #tpu.pipeline_mode<synchronous>, transform_indices = @transform_5, window_bounds = array<i64: 16, 32>}]} {
    %c0 = arith.constant 0 : index
    %c0_0 = arith.constant 0 : index
    %0 = vector.load %arg1[%c0, %c0_0] : memref<16x16xf32, #tpu.memory_space<vmem>>, vector<16x16xf32>
    %c0_1 = arith.constant 0 : index
    %c0_2 = arith.constant 0 : index
    %1 = vector.load %arg2[%c0_1, %c0_2] : memref<16x384xf32, #tpu.memory_space<vmem>>, vector<16x384xf32>
    %cst = arith.constant dense<0.000000e+00> : vector<16x384xf32>
    %2 = tpu.matmul %0, %1, %cst {dimension_numbers = #tpu.dot_dimension_numbers<[1], [0], [0], [1], [0, 0, 1, 1], [], []>} : vector<16x16xf32>, vector<16x384xf32>, vector<16x384xf32> -> vector<16x384xf32>
    %c0_3 = arith.constant 0 : index
    %c0_4 = arith.constant 0 : index
    %3 = vector.load %arg3[%c0_3, %c0_4] : memref<1x384xf32, #tpu.memory_space<vmem>>, vector<1x384xf32>
    %4 = vector.broadcast %3 : vector<1x384xf32> to vector<16x384xf32>
    %5 = arith.addf %2, %4 : vector<16x384xf32>
    %6 = vector.extract_strided_slice %5 {offsets = [0, 0], sizes = [8, 32], strides = [1, 1]} : vector<16x384xf32> to vector<8x32xf32>
    %7 = vector.extract_strided_slice %5 {offsets = [0, 128], sizes = [8, 32], strides = [1, 1]} : vector<16x384xf32> to vector<8x32xf32>
    %8 = vector.extract_strided_slice %5 {offsets = [0, 256], sizes = [8, 32], strides = [1, 1]} : vector<16x384xf32> to vector<8x32xf32>
    %cst_5 = arith.constant dense<0.000000e+00> : vector<8x8xf32>
    %9 = tpu.matmul %6, %7, %cst_5 {dimension_numbers = #tpu.dot_dimension_numbers<[1], [1], [0], [0], [0, 0, 1, 0], [], []>} : vector<8x32xf32>, vector<8x32xf32>, vector<8x8xf32> -> vector<8x8xf32>
    %cst_6 = arith.constant dense<0xFF800000> : vector<8xf32>
    %10 = vector.multi_reduction <maximumf>, %9, %cst_6 [1] : vector<8x8xf32> to vector<8xf32>
    %11 = vector.shape_cast %10 : vector<8xf32> to vector<8x1xf32>
    %12 = vector.broadcast %11 : vector<8x1xf32> to vector<8x8xf32>
    %13 = arith.subf %9, %12 : vector<8x8xf32>
    %14 = math.exp %13 : vector<8x8xf32>
    %cst_7 = arith.constant dense<0.000000e+00> : vector<8xf32>
    %15 = vector.multi_reduction <add>, %14, %cst_7 [1] : vector<8x8xf32> to vector<8xf32>
    %16 = vector.shape_cast %15 : vector<8xf32> to vector<8x1xf32>
    %17 = tpu.reciprocal %16 : vector<8x1xf32> -> vector<8x1xf32>
    %18 = vector.broadcast %17 : vector<8x1xf32> to vector<8x8xf32>
    %19 = arith.mulf %14, %18 : vector<8x8xf32>
    %cst_8 = arith.constant dense<0.000000e+00> : vector<8x32xf32>
    %20 = tpu.matmul %19, %8, %cst_8 {dimension_numbers = #tpu.dot_dimension_numbers<[1], [0], [0], [1], [0, 0, 1, 1], [], []>} : vector<8x8xf32>, vector<8x32xf32>, vector<8x32xf32> -> vector<8x32xf32>
    %21 = vector.extract_strided_slice %5 {offsets = [0, 32], sizes = [8, 32], strides = [1, 1]} : vector<16x384xf32> to vector<8x32xf32>
    %22 = vector.extract_strided_slice %5 {offsets = [0, 160], sizes = [8, 32], strides = [1, 1]} : vector<16x384xf32> to vector<8x32xf32>
    %23 = vector.extract_strided_slice %5 {offsets = [0, 288], sizes = [8, 32], strides = [1, 1]} : vector<16x384xf32> to vector<8x32xf32>
    %cst_9 = arith.constant dense<0.000000e+00> : vector<8x8xf32>
    %24 = tpu.matmul %21, %22, %cst_9 {dimension_numbers = #tpu.dot_dimension_numbers<[1], [1], [0], [0], [0, 0, 1, 0], [], []>} : vector<8x32xf32>, vector<8x32xf32>, vector<8x8xf32> -> vector<8x8xf32>
    %cst_10 = arith.constant dense<0xFF800000> : vector<8xf32>
    %25 = vector.multi_reduction <maximumf>, %24, %cst_10 [1] : vector<8x8xf32> to vector<8xf32>
    %26 = vector.shape_cast %25 : vector<8xf32> to vector<8x1xf32>
    %27 = vector.broadcast %26 : vector<8x1xf32> to vector<8x8xf32>
    %28 = arith.subf %24, %27 : vector<8x8xf32>
    %29 = math.exp %28 : vector<8x8xf32>
    %cst_11 = arith.constant dense<0.000000e+00> : vector<8xf32>
    %30 = vector.multi_reduction <add>, %29, %cst_11 [1] : vector<8x8xf32> to vector<8xf32>
    %31 = vector.shape_cast %30 : vector<8xf32> to vector<8x1xf32>
    %32 = tpu.reciprocal %31 : vector<8x1xf32> -> vector<8x1xf32>
    %33 = vector.broadcast %32 : vector<8x1xf32> to vector<8x8xf32>
    %34 = arith.mulf %29, %33 : vector<8x8xf32>
    %cst_12 = arith.constant dense<0.000000e+00> : vector<8x32xf32>
    %35 = tpu.matmul %34, %23, %cst_12 {dimension_numbers = #tpu.dot_dimension_numbers<[1], [0], [0], [1], [0, 0, 1, 1], [], []>} : vector<8x8xf32>, vector<8x32xf32>, vector<8x32xf32> -> vector<8x32xf32>
    %36 = vector.extract_strided_slice %5 {offsets = [0, 64], sizes = [8, 32], strides = [1, 1]} : vector<16x384xf32> to vector<8x32xf32>
    %37 = vector.extract_strided_slice %5 {offsets = [0, 192], sizes = [8, 32], strides = [1, 1]} : vector<16x384xf32> to vector<8x32xf32>
    %38 = vector.extract_strided_slice %5 {offsets = [0, 320], sizes = [8, 32], strides = [1, 1]} : vector<16x384xf32> to vector<8x32xf32>
    %cst_13 = arith.constant dense<0.000000e+00> : vector<8x8xf32>
    %39 = tpu.matmul %36, %37, %cst_13 {dimension_numbers = #tpu.dot_dimension_numbers<[1], [1], [0], [0], [0, 0, 1, 0], [], []>} : vector<8x32xf32>, vector<8x32xf32>, vector<8x8xf32> -> vector<8x8xf32>
    %cst_14 = arith.constant dense<0xFF800000> : vector<8xf32>
    %40 = vector.multi_reduction <maximumf>, %39, %cst_14 [1] : vector<8x8xf32> to vector<8xf32>
    %41 = vector.shape_cast %40 : vector<8xf32> to vector<8x1xf32>
    %42 = vector.broadcast %41 : vector<8x1xf32> to vector<8x8xf32>
    %43 = arith.subf %39, %42 : vector<8x8xf32>
    %44 = math.exp %43 : vector<8x8xf32>
    %cst_15 = arith.constant dense<0.000000e+00> : vector<8xf32>
    %45 = vector.multi_reduction <add>, %44, %cst_15 [1] : vector<8x8xf32> to vector<8xf32>
    %46 = vector.shape_cast %45 : vector<8xf32> to vector<8x1xf32>
    %47 = tpu.reciprocal %46 : vector<8x1xf32> -> vector<8x1xf32>
    %48 = vector.broadcast %47 : vector<8x1xf32> to vector<8x8xf32>
    %49 = arith.mulf %44, %48 : vector<8x8xf32>
    %cst_16 = arith.constant dense<0.000000e+00> : vector<8x32xf32>
    %50 = tpu.matmul %49, %38, %cst_16 {dimension_numbers = #tpu.dot_dimension_numbers<[1], [0], [0], [1], [0, 0, 1, 1], [], []>} : vector<8x8xf32>, vector<8x32xf32>, vector<8x32xf32> -> vector<8x32xf32>
    %51 = vector.extract_strided_slice %5 {offsets = [0, 96], sizes = [8, 32], strides = [1, 1]} : vector<16x384xf32> to vector<8x32xf32>
    %52 = vector.extract_strided_slice %5 {offsets = [0, 224], sizes = [8, 32], strides = [1, 1]} : vector<16x384xf32> to vector<8x32xf32>
    %53 = vector.extract_strided_slice %5 {offsets = [0, 352], sizes = [8, 32], strides = [1, 1]} : vector<16x384xf32> to vector<8x32xf32>
    %cst_17 = arith.constant dense<0.000000e+00> : vector<8x8xf32>
    %54 = tpu.matmul %51, %52, %cst_17 {dimension_numbers = #tpu.dot_dimension_numbers<[1], [1], [0], [0], [0, 0, 1, 0], [], []>} : vector<8x32xf32>, vector<8x32xf32>, vector<8x8xf32> -> vector<8x8xf32>
    %cst_18 = arith.constant dense<0xFF800000> : vector<8xf32>
    %55 = vector.multi_reduction <maximumf>, %54, %cst_18 [1] : vector<8x8xf32> to vector<8xf32>
    %56 = vector.shape_cast %55 : vector<8xf32> to vector<8x1xf32>
    %57 = vector.broadcast %56 : vector<8x1xf32> to vector<8x8xf32>
    %58 = arith.subf %54, %57 : vector<8x8xf32>
    %59 = math.exp %58 : vector<8x8xf32>
    %cst_19 = arith.constant dense<0.000000e+00> : vector<8xf32>
    %60 = vector.multi_reduction <add>, %59, %cst_19 [1] : vector<8x8xf32> to vector<8xf32>
    %61 = vector.shape_cast %60 : vector<8xf32> to vector<8x1xf32>
    %62 = tpu.reciprocal %61 : vector<8x1xf32> -> vector<8x1xf32>
    %63 = vector.broadcast %62 : vector<8x1xf32> to vector<8x8xf32>
    %64 = arith.mulf %59, %63 : vector<8x8xf32>
    %cst_20 = arith.constant dense<0.000000e+00> : vector<8x32xf32>
    %65 = tpu.matmul %64, %53, %cst_20 {dimension_numbers = #tpu.dot_dimension_numbers<[1], [0], [0], [1], [0, 0, 1, 1], [], []>} : vector<8x8xf32>, vector<8x32xf32>, vector<8x32xf32> -> vector<8x32xf32>
    %66 = tpu.concatenate %20, %35, %50, %65 in 1 : vector<8x32xf32>, vector<8x32xf32>, vector<8x32xf32>, vector<8x32xf32> -> vector<8x128xf32>
    %67 = vector.extract_strided_slice %5 {offsets = [8, 0], sizes = [8, 32], strides = [1, 1]} : vector<16x384xf32> to vector<8x32xf32>
    %68 = vector.extract_strided_slice %5 {offsets = [8, 128], sizes = [8, 32], strides = [1, 1]} : vector<16x384xf32> to vector<8x32xf32>
    %69 = vector.extract_strided_slice %5 {offsets = [8, 256], sizes = [8, 32], strides = [1, 1]} : vector<16x384xf32> to vector<8x32xf32>
    %cst_21 = arith.constant dense<0.000000e+00> : vector<8x8xf32>
    %70 = tpu.matmul %67, %68, %cst_21 {dimension_numbers = #tpu.dot_dimension_numbers<[1], [1], [0], [0], [0, 0, 1, 0], [], []>} : vector<8x32xf32>, vector<8x32xf32>, vector<8x8xf32> -> vector<8x8xf32>
    %cst_22 = arith.constant dense<0xFF800000> : vector<8xf32>
    %71 = vector.multi_reduction <maximumf>, %70, %cst_22 [1] : vector<8x8xf32> to vector<8xf32>
    %72 = vector.shape_cast %71 : vector<8xf32> to vector<8x1xf32>
    %73 = vector.broadcast %72 : vector<8x1xf32> to vector<8x8xf32>
    %74 = arith.subf %70, %73 : vector<8x8xf32>
    %75 = math.exp %74 : vector<8x8xf32>
    %cst_23 = arith.constant dense<0.000000e+00> : vector<8xf32>
    %76 = vector.multi_reduction <add>, %75, %cst_23 [1] : vector<8x8xf32> to vector<8xf32>
    %77 = vector.shape_cast %76 : vector<8xf32> to vector<8x1xf32>
    %78 = tpu.reciprocal %77 : vector<8x1xf32> -> vector<8x1xf32>
    %79 = vector.broadcast %78 : vector<8x1xf32> to vector<8x8xf32>
    %80 = arith.mulf %75, %79 : vector<8x8xf32>
    %cst_24 = arith.constant dense<0.000000e+00> : vector<8x32xf32>
    %81 = tpu.matmul %80, %69, %cst_24 {dimension_numbers = #tpu.dot_dimension_numbers<[1], [0], [0], [1], [0, 0, 1, 1], [], []>} : vector<8x8xf32>, vector<8x32xf32>, vector<8x32xf32> -> vector<8x32xf32>
    %82 = vector.extract_strided_slice %5 {offsets = [8, 32], sizes = [8, 32], strides = [1, 1]} : vector<16x384xf32> to vector<8x32xf32>
    %83 = vector.extract_strided_slice %5 {offsets = [8, 160], sizes = [8, 32], strides = [1, 1]} : vector<16x384xf32> to vector<8x32xf32>
    %84 = vector.extract_strided_slice %5 {offsets = [8, 288], sizes = [8, 32], strides = [1, 1]} : vector<16x384xf32> to vector<8x32xf32>
    %cst_25 = arith.constant dense<0.000000e+00> : vector<8x8xf32>
    %85 = tpu.matmul %82, %83, %cst_25 {dimension_numbers = #tpu.dot_dimension_numbers<[1], [1], [0], [0], [0, 0, 1, 0], [], []>} : vector<8x32xf32>, vector<8x32xf32>, vector<8x8xf32> -> vector<8x8xf32>
    %cst_26 = arith.constant dense<0xFF800000> : vector<8xf32>
    %86 = vector.multi_reduction <maximumf>, %85, %cst_26 [1] : vector<8x8xf32> to vector<8xf32>
    %87 = vector.shape_cast %86 : vector<8xf32> to vector<8x1xf32>
    %88 = vector.broadcast %87 : vector<8x1xf32> to vector<8x8xf32>
    %89 = arith.subf %85, %88 : vector<8x8xf32>
    %90 = math.exp %89 : vector<8x8xf32>
    %cst_27 = arith.constant dense<0.000000e+00> : vector<8xf32>
    %91 = vector.multi_reduction <add>, %90, %cst_27 [1] : vector<8x8xf32> to vector<8xf32>
    %92 = vector.shape_cast %91 : vector<8xf32> to vector<8x1xf32>
    %93 = tpu.reciprocal %92 : vector<8x1xf32> -> vector<8x1xf32>
    %94 = vector.broadcast %93 : vector<8x1xf32> to vector<8x8xf32>
    %95 = arith.mulf %90, %94 : vector<8x8xf32>
    %cst_28 = arith.constant dense<0.000000e+00> : vector<8x32xf32>
    %96 = tpu.matmul %95, %84, %cst_28 {dimension_numbers = #tpu.dot_dimension_numbers<[1], [0], [0], [1], [0, 0, 1, 1], [], []>} : vector<8x8xf32>, vector<8x32xf32>, vector<8x32xf32> -> vector<8x32xf32>
    %97 = vector.extract_strided_slice %5 {offsets = [8, 64], sizes = [8, 32], strides = [1, 1]} : vector<16x384xf32> to vector<8x32xf32>
    %98 = vector.extract_strided_slice %5 {offsets = [8, 192], sizes = [8, 32], strides = [1, 1]} : vector<16x384xf32> to vector<8x32xf32>
    %99 = vector.extract_strided_slice %5 {offsets = [8, 320], sizes = [8, 32], strides = [1, 1]} : vector<16x384xf32> to vector<8x32xf32>
    %cst_29 = arith.constant dense<0.000000e+00> : vector<8x8xf32>
    %100 = tpu.matmul %97, %98, %cst_29 {dimension_numbers = #tpu.dot_dimension_numbers<[1], [1], [0], [0], [0, 0, 1, 0], [], []>} : vector<8x32xf32>, vector<8x32xf32>, vector<8x8xf32> -> vector<8x8xf32>
    %cst_30 = arith.constant dense<0xFF800000> : vector<8xf32>
    %101 = vector.multi_reduction <maximumf>, %100, %cst_30 [1] : vector<8x8xf32> to vector<8xf32>
    %102 = vector.shape_cast %101 : vector<8xf32> to vector<8x1xf32>
    %103 = vector.broadcast %102 : vector<8x1xf32> to vector<8x8xf32>
    %104 = arith.subf %100, %103 : vector<8x8xf32>
    %105 = math.exp %104 : vector<8x8xf32>
    %cst_31 = arith.constant dense<0.000000e+00> : vector<8xf32>
    %106 = vector.multi_reduction <add>, %105, %cst_31 [1] : vector<8x8xf32> to vector<8xf32>
    %107 = vector.shape_cast %106 : vector<8xf32> to vector<8x1xf32>
    %108 = tpu.reciprocal %107 : vector<8x1xf32> -> vector<8x1xf32>
    %109 = vector.broadcast %108 : vector<8x1xf32> to vector<8x8xf32>
    %110 = arith.mulf %105, %109 : vector<8x8xf32>
    %cst_32 = arith.constant dense<0.000000e+00> : vector<8x32xf32>
    %111 = tpu.matmul %110, %99, %cst_32 {dimension_numbers = #tpu.dot_dimension_numbers<[1], [0], [0], [1], [0, 0, 1, 1], [], []>} : vector<8x8xf32>, vector<8x32xf32>, vector<8x32xf32> -> vector<8x32xf32>
    %112 = vector.extract_strided_slice %5 {offsets = [8, 96], sizes = [8, 32], strides = [1, 1]} : vector<16x384xf32> to vector<8x32xf32>
    %113 = vector.extract_strided_slice %5 {offsets = [8, 224], sizes = [8, 32], strides = [1, 1]} : vector<16x384xf32> to vector<8x32xf32>
    %114 = vector.extract_strided_slice %5 {offsets = [8, 352], sizes = [8, 32], strides = [1, 1]} : vector<16x384xf32> to vector<8x32xf32>
    %cst_33 = arith.constant dense<0.000000e+00> : vector<8x8xf32>
    %115 = tpu.matmul %112, %113, %cst_33 {dimension_numbers = #tpu.dot_dimension_numbers<[1], [1], [0], [0], [0, 0, 1, 0], [], []>} : vector<8x32xf32>, vector<8x32xf32>, vector<8x8xf32> -> vector<8x8xf32>
    %cst_34 = arith.constant dense<0xFF800000> : vector<8xf32>
    %116 = vector.multi_reduction <maximumf>, %115, %cst_34 [1] : vector<8x8xf32> to vector<8xf32>
    %117 = vector.shape_cast %116 : vector<8xf32> to vector<8x1xf32>
    %118 = vector.broadcast %117 : vector<8x1xf32> to vector<8x8xf32>
    %119 = arith.subf %115, %118 : vector<8x8xf32>
    %120 = math.exp %119 : vector<8x8xf32>
    %cst_35 = arith.constant dense<0.000000e+00> : vector<8xf32>
    %121 = vector.multi_reduction <add>, %120, %cst_35 [1] : vector<8x8xf32> to vector<8xf32>
    %122 = vector.shape_cast %121 : vector<8xf32> to vector<8x1xf32>
    %123 = tpu.reciprocal %122 : vector<8x1xf32> -> vector<8x1xf32>
    %124 = vector.broadcast %123 : vector<8x1xf32> to vector<8x8xf32>
    %125 = arith.mulf %120, %124 : vector<8x8xf32>
    %cst_36 = arith.constant dense<0.000000e+00> : vector<8x32xf32>
    %126 = tpu.matmul %125, %114, %cst_36 {dimension_numbers = #tpu.dot_dimension_numbers<[1], [0], [0], [1], [0, 0, 1, 1], [], []>} : vector<8x8xf32>, vector<8x32xf32>, vector<8x32xf32> -> vector<8x32xf32>
    %127 = tpu.concatenate %81, %96, %111, %126 in 1 : vector<8x32xf32>, vector<8x32xf32>, vector<8x32xf32>, vector<8x32xf32> -> vector<8x128xf32>
    %128 = tpu.concatenate %66, %127 in 0 : vector<8x128xf32>, vector<8x128xf32> -> vector<16x128xf32>
    %c0_37 = arith.constant 0 : index
    %c0_38 = arith.constant 0 : index
    %129 = vector.load %arg4[%c0_37, %c0_38] : memref<128x32xf32, #tpu.memory_space<vmem>>, vector<128x32xf32>
    %cst_39 = arith.constant dense<0.000000e+00> : vector<16x32xf32>
    %130 = tpu.matmul %128, %129, %cst_39 {dimension_numbers = #tpu.dot_dimension_numbers<[1], [0], [0], [1], [0, 0, 1, 1], [], []>} : vector<16x128xf32>, vector<128x32xf32>, vector<16x32xf32> -> vector<16x32xf32>
    %c0_40 = arith.constant 0 : index
    %c0_41 = arith.constant 0 : index
    %131 = vector.load %arg5[%c0_40, %c0_41] : memref<1x32xf32, #tpu.memory_space<vmem>>, vector<1x32xf32>
    %132 = vector.broadcast %131 : vector<1x32xf32> to vector<16x32xf32>
    %133 = arith.addf %130, %132 : vector<16x32xf32>
    %c0_42 = arith.constant 0 : index
    %c0_43 = arith.constant 0 : index
    %134 = vector.load %arg6[%c0_42, %c0_43] : memref<16x32xf32, #tpu.memory_space<vmem>>, vector<16x32xf32>
    tpu.vector_store %arg6[%c0_42, %c0_43], %133 {strides = array<i32>} : memref<16x32xf32, #tpu.memory_space<vmem>>, vector<16x32xf32>,
    return
  }
  func.func @transform_0(%arg0: i32) -> (i32, i32) {
    %c0_i32 = arith.constant 0 : i32
    %c0_i32_0 = arith.constant 0 : i32
    %c0_i32_1 = arith.constant 0 : i32
    return %c0_i32, %c0_i32_0 : i32, i32
  }
  func.func @transform_1(%arg0: i32) -> (i32, i32) {
    %c0_i32 = arith.constant 0 : i32
    %c0_i32_0 = arith.constant 0 : i32
    %c0_i32_1 = arith.constant 0 : i32
    return %c0_i32, %c0_i32_0 : i32, i32
  }
  func.func @transform_2(%arg0: i32) -> (i32, i32) {
    %c0_i32 = arith.constant 0 : i32
    %c0_i32_0 = arith.constant 0 : i32
    %c0_i32_1 = arith.constant 0 : i32
    return %c0_i32, %c0_i32_0 : i32, i32
  }
  func.func @transform_3(%arg0: i32) -> (i32, i32) {
    %c0_i32 = arith.constant 0 : i32
    %c0_i32_0 = arith.constant 0 : i32
    %c0_i32_1 = arith.constant 0 : i32
    return %c0_i32, %c0_i32_0 : i32, i32
  }
  func.func @transform_4(%arg0: i32) -> (i32, i32) {
    %c0_i32 = arith.constant 0 : i32
    %c0_i32_0 = arith.constant 0 : i32
    %c0_i32_1 = arith.constant 0 : i32
    return %c0_i32, %c0_i32_0 : i32, i32
  }
  func.func @transform_5(%arg0: i32) -> (i32, i32) {
    %c0_i32 = arith.constant 0 : i32
    %c0_i32_0 = arith.constant 0 : i32
    %c0_i32_1 = arith.constant 0 : i32
    return %c0_i32, %c0_i32_0 : i32, i32
  }
}

</mosaic_0001>

<bundles_post_ra>
// kernel: attention_head_forward.1
= control target key start
LH: loop header
LB: loop body
LE: loop exit
PB: predicated region body
PF: predicated region fallthrough
CT: control target
= control target key end

     0   :  { %v1949_v4 = vmov 0.0   ;;  %vm46_vm0 = vcmask 130048   ;;  %s2226_s0 = inlined_call_operand.vmem [shape: f32[16,16], index: 0, kind: input, shape index: {}]   ;;  %s2227_s1 = inlined_call_operand.vmem [shape: f32[16,384], index: 1, kind: input, shape index: {}]   ;;  %s2228_s2 = inlined_call_operand.vmem [shape: f32[1,384], index: 2, kind: input, shape index: {}]   ;;  %s2229_s3 = inlined_call_operand.vmem [shape: f32[128,32], index: 3, kind: input, shape index: {}]   ;;  %s2230_s4 = inlined_call_operand.vmem [shape: f32[1,32], index: 4, kind: input, shape index: {}]   ;;  %s2231_s5 = inlined_call_operand.hbm [shape: f32[16,32], index: 5, kind: output, shape index: {}]  }
   0x1   :  { %v27_v0 = vld [vmem:[%s2227_s1 + $0x20] sm:$0xff]  ;;  %v26_v1 = vld [vmem:[%s2227_s1 + $0x18] sm:$0xff]  ;;  %v24_v2 = vld [vmem:[%s2227_s1 + $0x8] sm:$0xff]  ;;  %117 = vmatprep.mubr.f32.mxu0 %v1949_v4  ;;  %1777 = vmatprep.subr.mxu1 %v1949_v4 }
   0x2   :  { %81 = vmatprep.subr.mxu0 %v27_v0  ;;  %v23_v3 = vld [vmem:[%s2227_s1] sm:$0xff]  ;;  %v28_v6 = vld [vmem:[%s2227_s1 + $0x28] sm:$0xff] }
   0x3   :  { %82 = vmatpush1.msra.mxu0 %v26_v1  ;;  %v21_v5 = vld [vmem:[%s2226_s0] sm:$0xff] }
   0x4   :  { %10 = vsyncpa [#allocation3], 0  ;;  %83 = vmatprep.subr.mxu0 %v24_v2  ;;  %v22_v7 = vld [vmem:[%s2226_s0 + $0x8] sm:$0xff]  ;;  %v25_v8 = vld [vmem:[%s2227_s1 + $0x10] sm:$0xff]  ;;  %vm1950_vm1 = vmmov 0   ;;  %v31_v9 = vlaneseq  ;;  %vm205_vm2 = vcmask 261120  }
   0x5   :  { %84 = vmatpush1.msra.mxu0 %v23_v3  ;;  %1779 = vmatprep.mubr.msk.f32.mxu1 %vm1950_vm1, %v1949_v4  ;;  %v29_v12 = vld [vmem:[%s2228_s2] sm:$0x7]  ;;  %s1951_s1 = smov 96   ;;  %s1952_s2 = smov 64   ;;  %vm282_vm3 = vcmask 64512   ;;  %vm876_vm4 = vcmask 523264  }
   0x6   :  { %1667 = vmatmul.mubr.msk.f32.vlgmr.msra.gmra.mxu0 %vm46_vm0, %v21_v5  ;;  %1750 = vmatprep.subr.mxu0 %v28_v6  ;;  %v32_v10 = vshrl.u32 %v31_v9, 7  ;;  %s1953_s10 = smov 32   ;;  %vm878_vm5 = vcmask 785408  }
   0x7   :  { %123 = vmatprep.mubr.f32.mxu0 %v1949_v4  ;;  %1751 = vmatpush3.msra.mxu0 %v28_v6 }
   0x8   :  { %1752 = vmatprep.subr.mxu0 %v25_v8  ;;  %v37_v11 = vsub.s32 1, %v32_v10  ;;  %v33_v13 = vsub.s32 0, %v32_v10  ;;  %v41_v24 = vsub.s32 2, %v32_v10 }
   0x9   :  { %1753 = vmatpush3.msra.mxu0 %v25_v8 }
   0xa   :  { %1668 = vmatmul.mubr.msk.f32.gmra.mxu0 %vm46_vm0, %v22_v7  ;;  %1757 = vmatprep.subr.mxu0 %v1949_v4  ;;  %v38_v14 = vrot.slane %v29_v12, %v37_v11  ;;  %v34_v16 = vrot.slane %v29_v12, %v33_v13  ;;  %v42_v25 = vrot.slane %v29_v12, %v41_v24 }
   0xb   :  { %1754 = vmatprep.mubr.msk.f32.mxu0 %vm46_vm0, %v21_v5 }
   0xe   :  { %1755 = vmatmul.mubr.msk.f32.vlgmr.msra.gmra.mxu0 %vm46_vm0, %v22_v7 }
   0xf   :  { %1759 = vmatprep.mubr.msk.f32.mxu0 %vm1950_vm1, %v1949_v4 }
  0xc6   :  { %v119_v15 = vpop.f32.mrf.mxu0 }
  0xc7   :  { %v120_v19 = vadd.f32 %v119_v15, %v34_v16 }
  0xc8   :  { %v121_v17 = vpop.f32.mrf.mxu0 }
  0xc9   :  { %v122_v18 = vadd.f32 %v121_v17, %v38_v14 }
  0xca   :  { %v125_v20 = vpop.f32.mrf.mxu0 }
  0xcb   :  { %369 = vrot.lane.b32.xlu1 %v122_v18, %s1951_s1  ;;  %1758 = vmatpush3.xpose.msk.msra.mxu0 %vm205_vm2, %v122_v18  ;;  %v126_v23 = vadd.f32 %v125_v20, %v34_v16 }
  0xcc   :  { %1762 = vmatprep.subr.mxu0 %v1949_v4  ;;  %v127_v21 = vpop.f32.mrf.mxu0 }
  0xcd   :  { %v128_v22 = vadd.f32 %v127_v21, %v38_v14 }
  0xce   :  { %1760 = vmatmul.mubr.msk.f32.vlgmr.msra.gmra.mxu0 %vm205_vm2, %v120_v19  ;;  %v1756_v26 = vpop.f32.mrf.mxu0 }
  0xcf   :  { %367 = vrot.lane.b32.xlu1 %v120_v19, %s1951_s1  ;;  %1764 = vmatprep.mubr.msk.f32.mxu0 %vm1950_vm1, %v1949_v4  ;;  %v2040_v27 = vadd.f32 %v1756_v26, %v42_v25 }
  0xd0   :  { %v196_v28 = vpop.f32.mrf.mxu0 }
  0xd1   :  { %v2042_v29 = vadd.f32 %v196_v28, %v42_v25 }
  0xd3   :  { %533 = vrot.lane.b32.xlu1 %v120_v19, %s1952_s2  ;;  %1763 = vmatpush3.msra.mxu0 %v2042_v29 }
  0xd4   :  { %1767 = vmatprep.subr.mxu0 %v1949_v4 }
  0xd7   :  { %700 = vrot.lane.b32.xlu1 %v122_v18, %s1953_s10 }
  0xdb   :  { %698 = vrot.lane.b32.xlu1 %v120_v19, %s1953_s10 }
  0xdf   :  { %1042 = vrot.lane.b32.xlu1 %v128_v22, %s1951_s1 }
  0xe3   :  { %1040 = vrot.lane.b32.xlu1 %v126_v23, %s1951_s1 }
  0xe7   :  { %1208 = vrot.lane.b32.xlu1 %v128_v22, %s1952_s2 }
  0xeb   :  { %1373 = vrot.lane.b32.xlu1 %v128_v22, %s1953_s10 }
 0x13d   :  { %v370_v38 = vpop.permute.xlu1 %369 }
 0x141   :  { %v368_v39 = vpop.permute.xlu1 %367 }
 0x145   :  { %v534_v40 = vpop.permute.xlu1 %533 }
 0x149   :  { %v701_v41 = vpop.permute.xlu1 %700 }
 0x14d   :  { %v699_v43 = vpop.permute.xlu1 %698 }
 0x151   :  { %v1043_v45 = vpop.permute.xlu1 %1042 }
 0x155   :  { %v1041_v46 = vpop.permute.xlu1 %1040 }
 0x159   :  { %v1209_v49 = vpop.permute.xlu1 %1208 }
 0x15d   :  { %v1374_v51 = vpop.permute.xlu1 %1373 }
 0x18e   :  { %v278_v30 = vpop.f32.mrf.mxu0 }
 0x18f   :  { %v283_v31 = vsel %vm282_vm3, %v278_v30, -inf }
 0x190   :  { %284 = vmax.xlane.f32.xlu0 %v283_v31  ;;  %v1761_v32 = vpop.f32.mrf.mxu0 }
 0x219   :  { %v285_v33 = vpop.xlane.xlu0 %284 }
 0x21a   :  { %v286_v34 = vsub.f32 %v278_v30, %v285_v33 }
 0x21c   :  { %v287_v35 = vmul.f32 1.442695, %v286_v34 }
 0x21e   :  { %1895 = vpow2.f32 %v287_v35 }
 0x22b   :  { %v1896_v36 = vpop.eup %1895 }
 0x22c   :  { %v289_v37 = vsel %vm282_vm3, %v1896_v36, 0.0 }
 0x22d   :  { %290 = vadd.xlane.f32.xlu0 %v289_v37 }
 0x243   :  { %535 = vrot.lane.b32.xlu0 %v122_v18, %s1952_s2 }
 0x247   :  { %1206 = vrot.lane.b32.xlu0 %v126_v23, %s1952_s2 }
 0x24b   :  { %1371 = vrot.lane.b32.xlu0 %v126_v23, %s1953_s10 }
 0x2b6   :  { %v291_v42 = vpop.xlane.xlu0 %290 }
 0x2b7   :  { %1897 = vrcp.f32 %v291_v42 }
 0x2ba   :  { %v536_v44 = vpop.permute.xlu0 %535 }
 0x2bb   :  { %1778 = vmatpush3.xpose.msk.msra.mxu1 %vm205_vm2, %v536_v44 }
 0x2bc   :  { %1787 = vmatprep.subr.mxu1 %v1949_v4 }
 0x2be   :  { %1780 = vmatmul.mubr.msk.f32.vlgmr.msra.gmra.mxu1 %vm205_vm2, %v534_v40  ;;  %v1207_v50 = vpop.permute.xlu0 %1206 }
 0x2bf   :  { %1788 = vmatpush3.xpose.msk.msra.mxu1 %vm205_vm2, %v701_v41  ;;  %1789 = vmatprep.mubr.msk.f32.mxu1 %vm1950_vm1, %v1949_v4 }
 0x2c0   :  { %1797 = vmatprep.subr.mxu1 %v1949_v4 }
 0x2c2   :  { %1790 = vmatmul.mubr.msk.f32.vlgmr.msra.gmra.mxu1 %vm205_vm2, %v699_v43  ;;  %v1372_v52 = vpop.permute.xlu0 %1371 }
 0x2c3   :  { %1798 = vmatpush3.xpose.msk.msra.mxu1 %vm205_vm2, %v128_v22  ;;  %1799 = vmatprep.mubr.msk.f32.mxu1 %vm1950_vm1, %v1949_v4 }
 0x2c4   :  { %v1898_v47 = vpop.eup %1897  ;;  %1807 = vmatprep.subr.mxu1 %v1949_v4 }
 0x2c5   :  { %v293_v48 = vmul.f32 %v1898_v47, %v1896_v36 }
 0x2c6   :  { %1800 = vmatmul.mubr.msk.f32.vlgmr.msra.gmra.mxu1 %vm205_vm2, %v126_v23 }
 0x2c7   :  { %1765 = vmatmul.mubr.msk.f32.vlgmr.msra.gmra.mxu0 %vm282_vm3, %v293_v48  ;;  %1808 = vmatpush3.xpose.msk.msra.mxu1 %vm205_vm2, %v1043_v45 }
 0x2c8   :  { %1768 = vmatpush3.xpose.msk.msra.mxu0 %vm205_vm2, %v370_v38  ;;  %1809 = vmatprep.mubr.msk.f32.mxu1 %vm1950_vm1, %v1949_v4 }
 0x2c9   :  { %1769 = vmatprep.mubr.msk.f32.mxu0 %vm1950_vm1, %v1949_v4  ;;  %1817 = vmatprep.subr.mxu1 %v1949_v4 }
 0x2ca   :  { %1810 = vmatmul.mubr.msk.f32.vlgmr.msra.gmra.mxu1 %vm205_vm2, %v1041_v46  ;;  %1772 = vmatprep.subr.mxu0 %v1949_v4 }
 0x2cb   :  { %1770 = vmatmul.mubr.msk.f32.vlgmr.msra.gmra.mxu0 %vm205_vm2, %v368_v39  ;;  %1818 = vmatpush3.xpose.msk.msra.mxu1 %vm205_vm2, %v1209_v49 }
 0x2cc   :  { %1819 = vmatprep.mubr.msk.f32.mxu1 %vm1950_vm1, %v1949_v4  ;;  %1827 = vmatprep.subr.mxu1 %v1949_v4 }
 0x2cd   :  { %1774 = vmatprep.mubr.msk.f32.mxu0 %vm1950_vm1, %v1949_v4 }
 0x2ce   :  { %1820 = vmatmul.mubr.msk.f32.vlgmr.msra.gmra.mxu1 %vm205_vm2, %v1207_v50 }
 0x2cf   :  { %1828 = vmatpush3.xpose.msk.msra.mxu1 %vm205_vm2, %v1374_v51  ;;  %1829 = vmatprep.mubr.msk.f32.mxu1 %vm1950_vm1, %v1949_v4 }
 0x2d2   :  { %1830 = vmatmul.mubr.msk.f32.vlgmr.msra.gmra.mxu1 %vm205_vm2, %v1372_v52 }
 0x37e   :  { %v607_v53 = vpop.f32.mrf.mxu1 }
 0x37f   :  { %v611_v54 = vsel %vm282_vm3, %v607_v53, -inf }
 0x380   :  { %612 = vmax.xlane.f32.xlu0 %v611_v54  ;;  %v1781_v55 = vpop.f32.mrf.mxu1 }
 0x382   :  { %v772_v56 = vpop.f32.mrf.mxu1 }
 0x383   :  { %v776_v57 = vsel %vm282_vm3, %v772_v56, -inf }
 0x384   :  { %777 = vmax.xlane.f32.xlu0 %v776_v57  ;;  %v1791_v58 = vpop.f32.mrf.mxu1 }
 0x386   :  { %v952_v59 = vpop.f32.mrf.mxu1 }
 0x387   :  { %v2088_v60 = vpop.f32.mrf.mxu0  ;;  %v956_v8 = vsel %vm282_vm3, %v952_v59, -inf }
 0x388   :  { %v1801_v61 = vpop.f32.mrf.mxu1 }
 0x389   :  { %v1766_v62 = vpop.f32.mrf.mxu0 }
 0x38a   :  { %v1114_v63 = vpop.f32.mrf.mxu1 }
 0x38b   :  { %v2090_v0 = vpop.f32.mrf.mxu0  ;;  %v1118_v1 = vsel %vm282_vm3, %v1114_v63, -inf }
 0x38c   :  { %1119 = vmax.xlane.f32.xlu0 %v1118_v1  ;;  %v1811_v2 = vpop.f32.mrf.mxu1  ;;  %v445_v3 = vsel %vm282_vm3, %v2090_v0, -inf }
 0x38d   :  { %446 = vmax.xlane.f32.xlu1 %v445_v3  ;;  %v1771_v5 = vpop.f32.mrf.mxu0 }
 0x38e   :  { %v1280_v6 = vpop.f32.mrf.mxu1 }
 0x38f   :  { %v1284_v12 = vsel %vm282_vm3, %v1280_v6, -inf }
 0x390   :  { %v1821_v7 = vpop.f32.mrf.mxu1 }
 0x391   :  { %957 = vmax.xlane.f32.xlu1 %v956_v8 }
 0x392   :  { %v1445_v9 = vpop.f32.mrf.mxu1 }
 0x393   :  { %v1449_v10 = vsel %vm282_vm3, %v1445_v9, -inf }
 0x394   :  { %1450 = vmax.xlane.f32.xlu0 %v1449_v10  ;;  %v1831_v11 = vpop.f32.mrf.mxu1 }
 0x395   :  { %1285 = vmax.xlane.f32.xlu1 %v1284_v12 }
 0x409   :  { %v613_v13 = vpop.xlane.xlu0 %612 }
 0x40a   :  { %v614_v14 = vsub.f32 %v607_v53, %v613_v13  ;;  %v1566_v13 = vld [vmem:[%s2229_s3 + $0x78] sm:$0xff] }
 0x40b   :  { %1837 = vmatprep.subr.mxu1 %v1566_v13 }
 0x40c   :  { %v615_v15 = vmul.f32 1.442695, %v614_v14  ;;  %v1565_v14 = vld [vmem:[%s2229_s3 + $0x70] sm:$0xff]  ;;  %1838 = vmatpush3.msra.mxu1 %v1566_v13 }
 0x40d   :  { %v778_v16 = vpop.xlane.xlu0 %777  ;;  %1839 = vmatprep.subr.mxu1 %v1565_v14 }
 0x40e   :  { %1899 = vpow2.f32 %v615_v15  ;;  %v779_v17 = vsub.f32 %v772_v56, %v778_v16  ;;  %v1564_v15 = vld [vmem:[%s2229_s3 + $0x68] sm:$0xff]  ;;  %1840 = vmatpush3.msra.mxu1 %v1565_v14  ;;  %v1562_v16 = vld [vmem:[%s2229_s3 + $0x58] sm:$0xff] }
 0x40f   :  { %1841 = vmatprep.subr.mxu1 %v1564_v15 }
 0x410   :  { %v780_v18 = vmul.f32 1.442695, %v779_v17  ;;  %1842 = vmatpush3.msra.mxu1 %v1564_v15  ;;  %v1561_v17 = vld [vmem:[%s2229_s3 + $0x50] sm:$0xff] }
 0x412   :  { %1901 = vpow2.f32 %v780_v18  ;;  %v1560_v18 = vld [vmem:[%s2229_s3 + $0x48] sm:$0xff] }
 0x415   :  { %v1120_v19 = vpop.xlane.xlu0 %1119 }
 0x416   :  { %v1121_v20 = vsub.f32 %v1114_v63, %v1120_v19  ;;  %v447_v21 = vpop.xlane.xlu1 %446  ;;  %v1559_v19 = vld [vmem:[%s2229_s3 + $0x40] sm:$0xff] }
 0x417   :  { %v448_v46 = vsub.f32 %v2090_v0, %v447_v21  ;;  %v1557_v21 = vld [vmem:[%s2229_s3 + $0x30] sm:$0xff] }
 0x418   :  { %v1122_v22 = vmul.f32 1.442695, %v1121_v20  ;;  %v1558_v20 = vld [vmem:[%s2229_s3 + $0x38] sm:$0xff] }
 0x419   :  { %v449_v47 = vmul.f32 1.442695, %v448_v46 }
 0x41a   :  { %1903 = vpow2.f32 %v1122_v22  ;;  %v958_v23 = vpop.xlane.xlu1 %957 }
 0x41b   :  { %v2098_v24 = vpop.eup %1899  ;;  %v959_v25 = vsub.f32 %v952_v59, %v958_v23 }
 0x41c   :  { %v617_v26 = vsel %vm282_vm3, %v2098_v24, 0.0 }
 0x41d   :  { %v960_v28 = vmul.f32 1.442695, %v959_v25  ;;  %618 = vadd.xlane.f32.xlu0 %v617_v26  ;;  %v1451_v30 = vpop.xlane.xlu0 %1450  ;;  %v1556_v26 = vld [vmem:[%s2229_s3 + $0x28] sm:$0xff] }
 0x41e   :  { %v1452_v31 = vsub.f32 %v1445_v9, %v1451_v30  ;;  %v1286_v32 = vpop.xlane.xlu1 %1285  ;;  %v1555_v30 = vld [vmem:[%s2229_s3 + $0x20] sm:$0xff] }
 0x41f   :  { %v2102_v33 = vpop.eup %1901  ;;  %1905 = vpow2.f32 %v960_v28  ;;  %v1287_v34 = vsub.f32 %v1280_v6, %v1286_v32  ;;  %v1554_v32 = vld [vmem:[%s2229_s3 + $0x18] sm:$0xff] }
 0x420   :  { %v1453_v35 = vmul.f32 1.442695, %v1452_v31  ;;  %v782_v36 = vsel %vm282_vm3, %v2102_v33, 0.0 }
 0x421   :  { %v1288_v37 = vmul.f32 1.442695, %v1287_v34  ;;  %783 = vadd.xlane.f32.xlu1 %v782_v36  ;;  %v1553_v34 = vld [vmem:[%s2229_s3 + $0x10] sm:$0xff]  ;;  %v1552_v36 = vld [vmem:[%s2229_s3 + $0x8] sm:$0xff] }
 0x422   :  { %1907 = vpow2.f32 %v1453_v35 }
 0x423   :  { %1909 = vpow2.f32 %v1288_v37  ;;  %v1551_v37 = vld [vmem:[%s2229_s3] sm:$0xff] }
 0x424   :  { %1911 = vpow2.f32 %v449_v47 }
 0x427   :  { %v2106_v38 = vpop.eup %1903 }
 0x428   :  { %v1124_v39 = vsel %vm282_vm3, %v2106_v38, 0.0 }
 0x429   :  { %1125 = vadd.xlane.f32.xlu1 %v1124_v39 }
 0x42c   :  { %v1906_v40 = vpop.eup %1905 }
 0x42d   :  { %v962_v41 = vsel %vm282_vm3, %v1906_v40, 0.0 }
 0x42e   :  { %963 = vadd.xlane.f32.xlu0 %v962_v41 }
 0x42f   :  { %v2111_v42 = vpop.eup %1907 }
 0x430   :  { %v2113_v43 = vpop.eup %1909  ;;  %v1455_v44 = vsel %vm282_vm3, %v2111_v42, 0.0 }
 0x431   :  { %1456 = vadd.xlane.f32.xlu1 %v1455_v44  ;;  %v1290_v45 = vsel %vm282_vm3, %v2113_v43, 0.0  ;;  %v1912_v48 = vpop.eup %1911 }
 0x432   :  { %1291 = vadd.xlane.f32.xlu0 %v1290_v45  ;;  %v451_v49 = vsel %vm282_vm3, %v1912_v48, 0.0 }
 0x442   :  { %622 = vrot.lane.b32.xlu1 %v2042_v29, %s1952_s2 }
 0x448   :  { %457 = vrot.lane.b32.xlu0 %v2042_v29, %s1951_s1 }
 0x44c   :  { %1130 = vrot.lane.b32.xlu0 %v2040_v27, %s1951_s1 }
 0x450   :  { %1460 = vrot.lane.b32.xlu0 %v2040_v27, %s1953_s10 }
 0x466   :  { %452 = vadd.xlane.f32.xlu1 %v451_v49 }
 0x477   :  { %787 = vrot.lane.b32.xlu1 %v2042_v29, %s1953_s10 }
 0x47b   :  { %1295 = vrot.lane.b32.xlu1 %v2040_v27, %s1952_s2 }
 0x4a6   :  { %v619_v50 = vpop.xlane.xlu0 %618 }
 0x4aa   :  { %v784_v54 = vpop.xlane.xlu1 %783 }
 0x4b2   :  { %v1126_v55 = vpop.xlane.xlu1 %1125 }
 0x4b7   :  { %v964_v51 = vpop.xlane.xlu0 %963 }
 0x4ba   :  { %v1457_v56 = vpop.xlane.xlu1 %1456 }
 0x4bb   :  { %v1292_v52 = vpop.xlane.xlu0 %1291 }
 0x4be   :  { %v623_v57 = vpop.permute.xlu1 %622 }
 0x4bf   :  { %v458_v53 = vpop.permute.xlu0 %457 }
 0x4c0   :  { %1773 = vmatpush3.msra.mxu0 %v458_v53 }
 0x4c1   :  { %1782 = vmatprep.subr.mxu0 %v1949_v4 }
 0x4c3   :  { %v1131_v6 = vpop.permute.xlu0 %1130 }
 0x4c7   :  { %v1461_v11 = vpop.permute.xlu0 %1460 }
 0x4ef   :  { %v453_v58 = vpop.xlane.xlu1 %452 }
 0x4f0   :  { %1913 = vrcp.f32 %v453_v58 }
 0x4f1   :  { %1915 = vrcp.f32 %v619_v50 }
 0x4f2   :  { %1917 = vrcp.f32 %v784_v54 }
 0x4f3   :  { %1919 = vrcp.f32 %v964_v51  ;;  %v788_v0 = vpop.permute.xlu1 %787 }
 0x4f4   :  { %1921 = vrcp.f32 %v1126_v55 }
 0x4f5   :  { %1923 = vrcp.f32 %v1292_v52 }
 0x4f6   :  { %1925 = vrcp.f32 %v1457_v56 }
 0x4fd   :  { %v1914_v29 = vpop.eup %1913 }
 0x4fe   :  { %v455_v59 = vmul.f32 %v1914_v29, %v1912_v48  ;;  %v1916_v61 = vpop.eup %1915 }
 0x4ff   :  { %v621_v62 = vmul.f32 %v1916_v61, %v2098_v24  ;;  %v1918_v63 = vpop.eup %1917 }
 0x500   :  { %1775 = vmatmul.mubr.msk.f32.vlgmr.msra.gmra.mxu0 %vm282_vm3, %v455_v59  ;;  %v786_v1 = vmul.f32 %v1918_v63, %v2102_v33  ;;  %v1920_v2 = vpop.eup %1919 }
 0x501   :  { %1783 = vmatpush3.msra.mxu0 %v623_v57  ;;  %1784 = vmatprep.mubr.msk.f32.mxu0 %vm1950_vm1, %v1949_v4  ;;  %v966_v3 = vmul.f32 %v1920_v2, %v1906_v40  ;;  %v1922_v5 = vpop.eup %1921 }
 0x502   :  { %1792 = vmatprep.subr.mxu0 %v1949_v4  ;;  %v1128_v7 = vmul.f32 %v1922_v5, %v2106_v38  ;;  %v1924_v8 = vpop.eup %1923 }
 0x503   :  { %v1294_v9 = vmul.f32 %v1924_v8, %v2113_v43  ;;  %v1926_v10 = vpop.eup %1925 }
 0x504   :  { %1785 = vmatmul.mubr.msk.f32.vlgmr.msra.gmra.mxu0 %vm282_vm3, %v621_v62  ;;  %v1459_v12 = vmul.f32 %v1926_v10, %v2111_v42  ;;  %v1695_v62 = vld [vmem:[%s2230_s4] ss:$0 sm:$0xff] }
 0x505   :  { %1793 = vmatpush3.msra.mxu0 %v788_v0  ;;  %1794 = vmatprep.mubr.msk.f32.mxu0 %vm1950_vm1, %v1949_v4 }
 0x506   :  { %1802 = vmatprep.subr.mxu0 %v1949_v4 }
 0x508   :  { %1795 = vmatmul.mubr.msk.f32.vlgmr.msra.gmra.mxu0 %vm282_vm3, %v786_v1 }
 0x509   :  { %1803 = vmatpush3.msra.mxu0 %v2040_v27  ;;  %1804 = vmatprep.mubr.msk.f32.mxu0 %vm1950_vm1, %v1949_v4  ;;  %v1296_v27 = vpop.permute.xlu1 %1295 }
 0x50a   :  { %1812 = vmatprep.subr.mxu0 %v1949_v4 }
 0x50c   :  { %1805 = vmatmul.mubr.msk.f32.vlgmr.msra.gmra.mxu0 %vm282_vm3, %v966_v3 }
 0x50d   :  { %1813 = vmatpush3.msra.mxu0 %v1131_v6  ;;  %1814 = vmatprep.mubr.msk.f32.mxu0 %vm1950_vm1, %v1949_v4 }
 0x50e   :  { %1822 = vmatprep.subr.mxu0 %v1949_v4 }
 0x510   :  { %1815 = vmatmul.mubr.msk.f32.vlgmr.msra.gmra.mxu0 %vm282_vm3, %v1128_v7 }
 0x511   :  { %1823 = vmatpush3.msra.mxu0 %v1296_v27  ;;  %1824 = vmatprep.mubr.msk.f32.mxu0 %vm1950_vm1, %v1949_v4 }
 0x512   :  { %1832 = vmatprep.subr.mxu0 %v1949_v4 }
 0x514   :  { %1825 = vmatmul.mubr.msk.f32.vlgmr.msra.gmra.mxu0 %vm282_vm3, %v1294_v9 }
 0x515   :  { %1833 = vmatpush3.msra.mxu0 %v1461_v11  ;;  %1834 = vmatprep.mubr.msk.f32.mxu0 %vm1950_vm1, %v1949_v4  ;;  %v1563_v4 = vld [vmem:[%s2229_s3 + $0x60] sm:$0xff] }
 0x516   :  { %1843 = vmatprep.subr.mxu1 %v1563_v4 }
 0x517   :  { %1844 = vmatpush3.msra.mxu1 %v1563_v4 }
 0x518   :  { %1835 = vmatmul.mubr.msk.f32.vlgmr.msra.gmra.mxu0 %vm282_vm3, %v1459_v12  ;;  %1845 = vmatprep.subr.mxu1 %v1562_v16 }
 0x519   :  { %1846 = vmatpush3.msra.mxu1 %v1562_v16 }
 0x51a   :  { %1847 = vmatprep.subr.mxu1 %v1561_v17 }
 0x51b   :  { %1848 = vmatpush3.msra.mxu1 %v1561_v17 }
 0x51c   :  { %1849 = vmatprep.subr.mxu1 %v1560_v18 }
 0x51d   :  { %1850 = vmatpush3.msra.mxu1 %v1560_v18 }
 0x51e   :  { %1851 = vmatprep.subr.mxu1 %v1559_v19 }
 0x51f   :  { %1852 = vmatpush3.msra.mxu1 %v1559_v19 }
 0x520   :  { %1853 = vmatprep.subr.mxu1 %v1558_v20 }
 0x521   :  { %1854 = vmatpush3.msra.mxu1 %v1558_v20 }
 0x522   :  { %1855 = vmatprep.subr.mxu1 %v1557_v21 }
 0x523   :  { %1856 = vmatpush3.msra.mxu1 %v1557_v21 }
 0x524   :  { %1857 = vmatprep.subr.mxu1 %v1556_v26 }
 0x525   :  { %1858 = vmatpush3.msra.mxu1 %v1556_v26 }
 0x526   :  { %1859 = vmatprep.subr.mxu1 %v1555_v30 }
 0x527   :  { %1860 = vmatpush3.msra.mxu1 %v1555_v30 }
 0x528   :  { %1861 = vmatprep.subr.mxu1 %v1554_v32 }
 0x529   :  { %1862 = vmatpush3.msra.mxu1 %v1554_v32 }
 0x52a   :  { %1863 = vmatprep.subr.mxu1 %v1553_v34 }
 0x52b   :  { %1864 = vmatpush3.msra.mxu1 %v1553_v34 }
 0x52c   :  { %1865 = vmatprep.subr.mxu1 %v1552_v36 }
 0x52d   :  { %1866 = vmatpush3.msra.mxu1 %v1552_v36 }
 0x52e   :  { %1867 = vmatprep.subr.mxu1 %v1551_v37 }
 0x52f   :  { %1868 = vmatpush3.msra.mxu1 %v1551_v37 }
 0x5c0   :  { %v529_v22 = vpop.f32.mrf.mxu0 }
 0x5c2   :  { %v1776_v23 = vpop.f32.mrf.mxu0 }
 0x5c4   :  { %v694_v24 = vpop.f32.mrf.mxu0 }
 0x5c6   :  { %v1786_v25 = vpop.f32.mrf.mxu0 }
 0x5c8   :  { %v859_v28 = vpop.f32.mrf.mxu0 }
 0x5ca   :  { %v1796_v31 = vpop.f32.mrf.mxu0 }
 0x5cc   :  { %v1036_v33 = vpop.f32.mrf.mxu0 }
 0x5ce   :  { %v1806_v35 = vpop.f32.mrf.mxu0 }
 0x5d0   :  { %v1202_v38 = vpop.f32.mrf.mxu0 }
 0x5d1   :  { %v1880_v39 = vpack.i.bf16 %v1202_v38, %v529_v22 }
 0x5d2   :  { %v1816_v40 = vpop.f32.mrf.mxu0 }
 0x5d3   :  { %1881 = vrot.lane.b32.xlu1 %v1880_v39, %s1953_s10 }
 0x5d4   :  { %v1367_v41 = vpop.f32.mrf.mxu0 }
 0x5d5   :  { %v1885_v42 = vpack.i.bf16 %v1367_v41, %v694_v24 }
 0x5d6   :  { %v1826_v43 = vpop.f32.mrf.mxu0 }
 0x5d7   :  { %1886 = vrot.lane.b32.xlu0 %v1885_v42, %s1952_s2  ;;  %s1954_s2 = smov [#allocation2]  }
 0x5d8   :  { %v1532_v44 = vpop.f32.mrf.mxu0  ;;  %s1656_s10 = sshll.u32 %s1954_s2, 4  ;;  %s1657_s10 = int_to_ptr.vmem [resolvable:$true] %s1656_s10 }
 0x5d9   :  { %v1890_v45 = vpack.i.bf16 %v1532_v44, %v859_v28  ;;  %s1927_s18 = scalar_lea.vmem %s1657_s10, 256  ;;  %p1932_p1 = scmp.lt.s32.totalorder %s1657_s10, %s1657_s10 }
 0x5da   :  { %v1836_v46 = vpop.f32.mrf.mxu0  ;;  %p1928_p0 = scmp.ne.s32.totalorder %s1657_s10, %s1927_s18  ;;  %p1933_p2 = scmp.lt.s32.totalorder %s1927_s18, %s1927_s18 }
 0x5db   :  { %1891 = vrot.lane.b32.xlu1 %v1890_v45, %s1951_s1 }
 0x5dc   :  { %p1934_p3 = por %p1933_p2, %p1932_p1 }
 0x5de   :  { %p1935_p4 = pnand %p1934_p3, %p1928_p0 }
 0x645   :  { %v1882_v47 = vpop.permute.xlu1 %1881 }
 0x646   :  { %v1884_v49 = vunpack.i.h.bf16 %v1882_v47  ;;  %v1883_v50 = vunpack.i.l.bf16 %v1882_v47 }
 0x648   :  { %v1548_v54 = vsel %vm205_vm2, %v1036_v33, %v1884_v49  ;;  %v875_v57 = vsel %vm205_vm2, %v2088_v60, %v1883_v50 }
 0x649   :  { %v1887_v48 = vpop.permute.xlu0 %1886 }
 0x64a   :  { %v1889_v51 = vunpack.i.h.bf16 %v1887_v48  ;;  %v1888_v52 = vunpack.i.l.bf16 %v1887_v48 }
 0x64c   :  { %v1549_v58 = vsel %vm876_vm4, %v1548_v54, %v1889_v51  ;;  %v877_v29 = vsel %vm876_vm4, %v875_v57, %v1888_v52 }
 0x64d   :  { %v1892_v53 = vpop.permute.xlu1 %1891 }
 0x64e   :  { %v1894_v55 = vunpack.i.h.bf16 %v1892_v53  ;;  %v1893_v56 = vunpack.i.l.bf16 %v1892_v53 }
 0x650   :  { %v879_v59 = vsel %vm878_vm5, %v877_v29, %v1893_v56  ;;  %v1550_v61 = vsel %vm878_vm5, %v1549_v58, %v1894_v55 }
 0x651   :  { %1869 = vmatprep.mubr.f32.mxu1 %v879_v59 }
 0x652   :  { %1870 = vmatmul.mubr.f32.vlgmr.msra.gmra.mxu1 %v1550_v61 }
 0x712   :  { %v1871_v63 = vpop.f32.mrf.mxu1 }
 0x713   :  { %v1646_v0 = vadd.f32 %v1871_v63, %v1695_v62 }
 0x714   :  { %v1640_v1 = vpop.f32.mrf.mxu1 }
 0x715   :  { %1650 = vst.msk [vmem:[#allocation2 + $0x8] sm:$0xff] %vm205_vm2, %v1646_v0  ;;  %v1641_v2 = vadd.f32 %v1695_v62, %v1640_v1 }
 0x717   :  { %1649 = vst.msk [vmem:[#allocation2] sm:$0xff] %vm205_vm2, %v1641_v2 }
 0x718   :  { %1938 = shalt.err (!%p1935_p4)
}
 0x719   :  { %s1955_s19 = smov 128   ;;  %s1956_s4 = smov 8  }
 0x71a   :  { %1662 = dma.vmem_to_hbm [thread:$0]  %s1657_s10, 256, %s2231_s5, [#allocation3], %s1955_s19, %s1955_s19, %s1956_s4  }
 0x71b   :  { %1947 = dma.done.wait [#allocation3], 256  }
 0x71c   :  { %1948 = vsyncadd [#allocation3], 4294967040 }
 0x71d   :  { %1666 = vsyncpa [#allocation3], 1 }

</bundles_post_ra>
